<compile_context>
chip_gen: v7x
topology: tpu7x:2x2x1
jax: 0.10.0
libtpu: 0.0.40
codegen_flags: <defaults>
</compile_context>

<pallas_src>
import math

import jax
import jax.numpy as jnp
from jax.experimental import pallas as pl
from jax.experimental.pallas import tpu as pltpu


def _round_up(x, m):
    return (x + m - 1) // m * m


def _decay_rnn_seq_kernel(r_ref, x_ref, h0_ref, w_ref, b_ref, out_ref, h_scr):
    """One grid step == one timestep for one batch block.

    Grid = (batch_blocks, T); the time axis is innermost ('arbitrary').
    h_scr (VMEM scratch) carries the hidden state across timesteps; the fused
    weight / bias block indices are constant so they stay resident in VMEM.
    """
    t = pl.program_id(1)

    @pl.when(t == 0)
    def _():
        h_scr[...] = h0_ref[...]

    r = r_ref[0]                                   # scalar rgate from SMEM
    h = h_scr[...]                                 # (Bblk, N_pad)

    # Fused activation [x_t (lane-padded) | h] -> single MXU matmul against the
    # stacked weight [W_ih^T ; W_hh^T]; bias_ih + bias_hh was pre-summed.
    act = jnp.concatenate([x_ref[0], h], axis=-1)  # (Bblk, K_pad + N_pad)
    mm = jnp.dot(act, w_ref[...],
                 preferred_element_type=jnp.float32) + b_ref[...]

    h_new = jnp.maximum(r * h + (1.0 - r) * mm, 0.0)   # ReLU nonlinearity
    h_scr[...] = h_new
    out_ref[0] = h_new


def make_decay_rnn(rgate, weight_ih, weight_hh, bias_ih, bias_hh):
    """One-time parameter prep (transpose / fuse / pad) + jitted sequence forward.

    Returned forward(x_seq, h0=None):
        x_seq: (B, T, input_size), h0: (B, hidden_size) or None (zeros)
        -> hidden states (B, T, hidden_size), each step identical to the
           PyTorch module's forward applied recurrently.
    """
    hidden_size, input_size = weight_ih.shape
    k_pad = _round_up(input_size, 128)   # lane-padded input width
    n_pad = _round_up(hidden_size, 128)  # lane-padded hidden width

    wih_t = jnp.zeros((k_pad, n_pad), jnp.float32)
    wih_t = wih_t.at[:input_size, :hidden_size].set(weight_ih.T.astype(jnp.float32))
    whh_t = jnp.zeros((n_pad, n_pad), jnp.float32)
    whh_t = whh_t.at[:hidden_size, :hidden_size].set(weight_hh.T.astype(jnp.float32))
    w_fused = jnp.concatenate([wih_t, whh_t], axis=0)        # (k_pad + n_pad, n_pad)

    b_fused = jnp.zeros((1, n_pad), jnp.float32)
    b_fused = b_fused.at[0, :hidden_size].set((bias_ih + bias_hh).astype(jnp.float32))
    r_arr = jnp.asarray(rgate, jnp.float32).reshape(1)

    @jax.jit
    def forward(x_seq, h0=None):
        b, t_len, _ = x_seq.shape
        if h0 is None:
            h0 = jnp.zeros((b, hidden_size), jnp.float32)

        b_pad = _round_up(b, 8)
        bblk = b_pad if b_pad <= 128 else 128
        b_pad = _round_up(b_pad, bblk)

        # Time-major, lane-padded activations; batch is the MXU M (sublane) dim.
        x_p = jnp.zeros((t_len, b_pad, k_pad), jnp.float32)
        x_p = x_p.at[:, :b, :input_size].set(
            jnp.swapaxes(x_seq, 0, 1).astype(jnp.float32))
        h0_p = jnp.zeros((b_pad, n_pad), jnp.float32)
        h0_p = h0_p.at[:b, :hidden_size].set(h0.astype(jnp.float32))

        grid_spec = pltpu.PrefetchScalarGridSpec(
            num_scalar_prefetch=0,
            grid=(b_pad // bblk, t_len),
            in_specs=[
                pl.BlockSpec(memory_space=pltpu.MemorySpace.SMEM),          # rgate
                pl.BlockSpec((1, bblk, k_pad), lambda i, t: (t, i, 0)),     # x_t
                pl.BlockSpec((bblk, n_pad), lambda i, t: (i, 0)),           # h0
                pl.BlockSpec((k_pad + n_pad, n_pad), lambda i, t: (0, 0)),  # fused W
                pl.BlockSpec((1, n_pad), lambda i, t: (0, 0)),              # fused bias
            ],
            out_specs=pl.BlockSpec((1, bblk, n_pad), lambda i, t: (t, i, 0)),
            scratch_shapes=[pltpu.VMEM((bblk, n_pad), jnp.float32)],
        )

        out = pl.pallas_call(
            _decay_rnn_seq_kernel,
            out_shape=jax.ShapeDtypeStruct((t_len, b_pad, n_pad), jnp.float32),
            grid_spec=grid_spec,
            compiler_params=pltpu.CompilerParams(
                dimension_semantics=("parallel", "arbitrary")),
        )(r_arr, x_p, h0_p, w_fused, b_fused)

        # strip batch / lane padding, back to (B, T, hidden)
        return jnp.swapaxes(out[:, :b, :hidden_size], 0, 1)

    return forward


def init_params(key, input_units, hidden_units, num_chunks=1):
    """Deterministic init matching reset_parameters(): uniform(-stdv, stdv)."""
    stdv = 1.0 / math.sqrt(hidden_units)
    ks = jax.random.split(key, 5)
    shape_ih = (num_chunks * hidden_units, input_units)
    shape_hh = (num_chunks * hidden_units, hidden_units)
    rgate = jax.random.uniform(ks[0], (), jnp.float32, -stdv, stdv)
    weight_ih = jax.random.uniform(ks[1], shape_ih, jnp.float32, -stdv, stdv)
    weight_hh = jax.random.uniform(ks[2], shape_hh, jnp.float32, -stdv, stdv)
    bias_ih = jax.random.uniform(ks[3], (num_chunks * hidden_units,), jnp.float32, -stdv, stdv)
    bias_hh = jax.random.uniform(ks[4], (num_chunks * hidden_units,), jnp.float32, -stdv, stdv)
    return rgate, weight_ih, weight_hh, bias_ih, bias_hh


def reference_step(rgate, weight_ih, weight_hh, bias_ih, bias_hh, x, h):
    """Batched pure-JAX version of LstmModule.forward (one timestep)."""
    w_x = bias_ih + jnp.dot(x, weight_ih.T, precision=jax.lax.Precision.HIGHEST)
    w_h = bias_hh + jnp.dot(h, weight_hh.T, precision=jax.lax.Precision.HIGHEST)
    w_w = rgate * h + (1.0 - rgate) * (w_x + w_h)
    return jnp.maximum(w_w, 0.0)


def reference_sequence(rgate, weight_ih, weight_hh, bias_ih, bias_hh, x_seq, h0):
    h = h0
    outs = []
    for t in range(x_seq.shape[1]):
        h = reference_step(rgate, weight_ih, weight_hh, bias_ih, bias_hh,
                           x_seq[:, t, :], h)
        outs.append(h)
    return jnp.stack(outs, axis=1)


if __name__ == "__main__":
    input_units, hidden_units = 64, 32
    batch, seq_len = 8, 16

    key = jax.random.PRNGKey(0)
    pkey, xkey, hkey = jax.random.split(key, 3)
    rgate, weight_ih, weight_hh, bias_ih, bias_hh = init_params(
        pkey, input_units, hidden_units)

    forward = make_decay_rnn(rgate, weight_ih, weight_hh, bias_ih, bias_hh)

    x_seq = jax.random.normal(xkey, (batch, seq_len, input_units), jnp.float32)

    # 1) full sequence, zero initial hidden state (module default hx=None)
    out = jax.block_until_ready(forward(x_seq))
    ref = reference_sequence(rgate, weight_ih, weight_hh, bias_ih, bias_hh,
                             x_seq, jnp.zeros((batch, hidden_units), jnp.float32))
    assert out.shape == (batch, seq_len, hidden_units)
    assert jnp.allclose(out, ref, atol=1e-4, rtol=1e-4)

    # 2) full sequence, nonzero initial hidden state
    h0 = jax.random.normal(hkey, (batch, hidden_units), jnp.float32)
    out2 = jax.block_until_ready(forward(x_seq, h0))
    ref2 = reference_sequence(rgate, weight_ih, weight_hh, bias_ih, bias_hh,
                              x_seq, h0)
    assert jnp.allclose(out2, ref2, atol=1e-4, rtol=1e-4)

    # 3) single step: exactly the module's forward(input_, hx)
    x_one = x_seq[0, 0]
    h_one = h0[0]
    out_step = jax.block_until_ready(
        forward(x_one[None, None, :], h_one[None, :]))[0, 0]
    ref_step = reference_step(rgate, weight_ih, weight_hh, bias_ih, bias_hh,
                              x_one[None, :], h_one[None, :])[0]
    assert jnp.allclose(out_step, ref_step, atol=1e-4, rtol=1e-4)

    print("KERNEL_OK")
</pallas_src>

<mosaic_0001>
module attributes {stable_mosaic.version = 11 : i64} {
  func.func @_decay_rnn_seq_kernel(%arg0: i32, %arg1: i32, %arg2: memref<1xf32, #tpu.memory_space<smem>>, %arg3: memref<1x8x128xf32, #tpu.memory_space<vmem>>, %arg4: memref<8x128xf32, #tpu.memory_space<vmem>>, %arg5: memref<256x128xf32, #tpu.memory_space<vmem>>, %arg6: memref<1x128xf32, #tpu.memory_space<vmem>>, %arg7: memref<1x8x128xf32, #tpu.memory_space<vmem>>, %arg8: memref<8x128xf32, #tpu.memory_space<vmem>>) attributes {dimension_semantics = [#tpu.dimension_semantics<parallel>, #tpu.dimension_semantics<arbitrary>], iteration_bounds = array<i64: 1, 16>, scalar_prefetch = 0 : i64, scratch_operands = 1 : i64, tpu.core_type = #tpu.core_type<tc>, window_params = [{transform_indices = @transform_0, window_bounds = array<i64: 1>}, {transform_indices = @transform_1, window_bounds = array<i64: 1, 8, 128>}, {transform_indices = @transform_2, window_bounds = array<i64: 8, 128>}, {pipeline_mode = #tpu.pipeline_mode<synchronous>, transform_indices = @transform_3, window_bounds = array<i64: 256, 128>}, {pipeline_mode = #tpu.pipeline_mode<synchronous>, transform_indices = @transform_4, window_bounds = array<i64: 1, 128>}, {transform_indices = @transform_5, window_bounds = array<i64: 1, 8, 128>}]} {
    %c0_i32 = arith.constant 0 : i32
    %0 = arith.cmpi eq, %arg1, %c0_i32 : i32
    %1 = arith.extui %0 : i1 to i32
    %c0_i32_0 = arith.constant 0 : i32
    %2 = arith.cmpi ne, %1, %c0_i32_0 : i32
    scf.if %2 {
      %c0_17 = arith.constant 0 : index
      %c0_18 = arith.constant 0 : index
      %25 = vector.load %arg4[%c0_17, %c0_18] : memref<8x128xf32, #tpu.memory_space<vmem>>, vector<8x128xf32>
      %c0_19 = arith.constant 0 : index
      %c0_20 = arith.constant 0 : index
      %26 = vector.load %arg8[%c0_19, %c0_20] : memref<8x128xf32, #tpu.memory_space<vmem>>, vector<8x128xf32>
      tpu.vector_store %arg8[%c0_19, %c0_20], %25 {strides = array<i32>} : memref<8x128xf32, #tpu.memory_space<vmem>>, vector<8x128xf32>,
    } else {
    }
    %c0 = arith.constant 0 : index
    %3 = memref.load %arg2[%c0] : memref<1xf32, #tpu.memory_space<smem>>
    %c0_1 = arith.constant 0 : index
    %c0_2 = arith.constant 0 : index
    %4 = vector.load %arg8[%c0_1, %c0_2] : memref<8x128xf32, #tpu.memory_space<vmem>>, vector<8x128xf32>
    %c0_3 = arith.constant 0 : index
    %c0_4 = arith.constant 0 : index
    %c0_5 = arith.constant 0 : index
    %5 = vector.load %arg3[%c0_3, %c0_4, %c0_5] : memref<1x8x128xf32, #tpu.memory_space<vmem>>, vector<1x8x128xf32>
    %6 = vector.shape_cast %5 : vector<1x8x128xf32> to vector<8x128xf32>
    %7 = tpu.concatenate %6, %4 in 1 : vector<8x128xf32>, vector<8x128xf32> -> vector<8x256xf32>
    %c0_6 = arith.constant 0 : index
    %c0_7 = arith.constant 0 : index
    %8 = vector.load %arg5[%c0_6, %c0_7] : memref<256x128xf32, #tpu.memory_space<vmem>>, vector<256x128xf32>
    %cst = arith.constant dense<0.000000e+00> : vector<8x128xf32>
    %9 = tpu.matmul %7, %8, %cst {dimension_numbers = #tpu.dot_dimension_numbers<[1], [0], [0], [1], [0, 0, 1, 1], [], []>} : vector<8x256xf32>, vector<256x128xf32>, vector<8x128xf32> -> vector<8x128xf32>
    %c0_8 = arith.constant 0 : index
    %c0_9 = arith.constant 0 : index
    %10 = vector.load %arg6[%c0_8, %c0_9] : memref<1x128xf32, #tpu.memory_space<vmem>>, vector<1x128xf32>
    %11 = vector.broadcast %10 : vector<1x128xf32> to vector<8x128xf32>
    %12 = arith.addf %9, %11 : vector<8x128xf32>
    %13 = vector.broadcast %3 : f32 to vector<8x128xf32>
    %14 = arith.mulf %13, %4 : vector<8x128xf32>
    %cst_10 = arith.constant 1.000000e+00 : f32
    %15 = arith.subf %cst_10, %3 : f32
    %16 = vector.broadcast %15 : f32 to vector<8x128xf32>
    %17 = arith.mulf %16, %12 : vector<8x128xf32>
    %18 = arith.addf %14, %17 : vector<8x128xf32>
    %cst_11 = arith.constant 0.000000e+00 : f32
    %19 = vector.broadcast %cst_11 : f32 to vector<8x128xf32>
    %20 = arith.maximumf %18, %19 : vector<8x128xf32>
    %c0_12 = arith.constant 0 : index
    %c0_13 = arith.constant 0 : index
    %21 = vector.load %arg8[%c0_12, %c0_13] : memref<8x128xf32, #tpu.memory_space<vmem>>, vector<8x128xf32>
    tpu.vector_store %arg8[%c0_12, %c0_13], %20 {strides = array<i32>} : memref<8x128xf32, #tpu.memory_space<vmem>>, vector<8x128xf32>,
    %c0_14 = arith.constant 0 : index
    %c0_15 = arith.constant 0 : index
    %c0_16 = arith.constant 0 : index
    %22 = vector.load %arg7[%c0_14, %c0_15, %c0_16] : memref<1x8x128xf32, #tpu.memory_space<vmem>>, vector<1x8x128xf32>
    %23 = vector.shape_cast %22 : vector<1x8x128xf32> to vector<8x128xf32>
    %24 = vector.shape_cast %20 : vector<8x128xf32> to vector<1x8x128xf32>
    tpu.vector_store %arg7[%c0_14, %c0_15, %c0_16], %24 {strides = array<i32>} : memref<1x8x128xf32, #tpu.memory_space<vmem>>, vector<1x8x128xf32>,
    return
  }
  func.func @transform_0(%arg0: i32, %arg1: i32) -> i32 {
    %c0_i32 = arith.constant 0 : i32
    %c0_i32_0 = arith.constant 0 : i32
    return %c0_i32 : i32
  }
  func.func @transform_1(%arg0: i32, %arg1: i32) -> (i32, i32, i32) {
    %c0_i32 = arith.constant 0 : i32
    %c0_i32_0 = arith.constant 0 : i32
    return %arg1, %arg0, %c0_i32 : i32, i32, i32
  }
  func.func @transform_2(%arg0: i32, %arg1: i32) -> (i32, i32) {
    %c0_i32 = arith.constant 0 : i32
    %c0_i32_0 = arith.constant 0 : i32
    return %arg0, %c0_i32 : i32, i32
  }
  func.func @transform_3(%arg0: i32, %arg1: i32) -> (i32, i32) {
    %c0_i32 = arith.constant 0 : i32
    %c0_i32_0 = arith.constant 0 : i32
    %c0_i32_1 = arith.constant 0 : i32
    return %c0_i32, %c0_i32_0 : i32, i32
  }
  func.func @transform_4(%arg0: i32, %arg1: i32) -> (i32, i32) {
    %c0_i32 = arith.constant 0 : i32
    %c0_i32_0 = arith.constant 0 : i32
    %c0_i32_1 = arith.constant 0 : i32
    return %c0_i32, %c0_i32_0 : i32, i32
  }
  func.func @transform_5(%arg0: i32, %arg1: i32) -> (i32, i32, i32) {
    %c0_i32 = arith.constant 0 : i32
    %c0_i32_0 = arith.constant 0 : i32
    return %arg1, %arg0, %c0_i32 : i32, i32, i32
  }
}

</mosaic_0001>

<bundles_post_ra>
// kernel: forward.1
= control target key start
LH: loop header
LB: loop body
LE: loop exit
PB: predicated region body
PF: predicated region fallthrough
CT: control target
= control target key end

     0   :  { %s646_s20 = smov 0   ;;  %s648_s21 = smov 0   ;;  %s787_s0 = inlined_call_operand.<no memory space> [shape: f32[1], index: 0, kind: input, shape index: {}]   ;;  %s788_s1 = inlined_call_operand.vmem [shape: f32[16,8,128], index: 1, kind: input, shape index: {}]   ;;  %s789_s2 = inlined_call_operand.vmem [shape: f32[8,128], index: 2, kind: input, shape index: {}]   ;;  %s790_s3 = inlined_call_operand.vmem [shape: f32[256,128], index: 3, kind: input, shape index: {}]   ;;  %s791_s4 = inlined_call_operand.vmem [shape: f32[1,128], index: 4, kind: input, shape index: {}]   ;;  %s792_s5 = inlined_call_operand.vmem [shape: f32[16,8,128], index: 5, kind: output, shape index: {}]  }
   0x1   :  { %10 = sst [smem:[#allocation3]] %s787_s0  ;;  %s650_s22 = smov 0  }
   0x2 LB: > { %s25_s0 = sadd.s32 1, %s607_s21  ;;  %p491_p0 = scmp.ge.s32.totalorder %s611_s22, 1  ;;  %s611_s22 = sphi %s650_s22, %s16_s22   ;;  %s607_s21 = sphi %s648_s21, %s794_s21   ;;  %s603_s20 = sphi %s646_s20, %s793_s20  }
   0x3   : > { %p26_p1 = scmp.ge.s32.totalorder %s25_s0, 16  ;;  %p215_p2 = scmp.lt.s32.totalorder %s611_s22, 17 }
   0x5   : > { %s796_s0 = smov (%p26_p1, %s25_s0), 0  ;;  %p216_p3 = pnand %p491_p0, %p215_p2 }
   0x6   : > { %p251_p4 = scmp.lt.s32.totalorder (!%p216_p3), %s603_s20, 15  ;;  %p494_p5 = scmp.ne.s32.totalorder (!%p216_p3), %s603_s20, 0 }
   0x7   : > { %219 = sbr.rel (%p216_p3) target bundleno = 281 (0x119), region = 40 }
   0xe   : > { %s252_s23 = scalar_select %p251_p4, %s603_s20, 15 }
   0xf   : > { %272 = sbr.rel (%p494_p5) target bundleno = 22 (0x16), region = 44  ;;  %v273_v0 = vld [vmem:[%s789_s2] sm:$0xff] (!%p494_p5) }
  0x10   : > { %s492_s24 = sshll.u32 %s252_s23, 3  ;;  %274 = vst [vmem:[#allocation2] sm:$0xff] (!%p494_p5), %v273_v0 }
  0x11   : > { %s667_s27 = scalar_lea.vmem %s788_s1, %s492_s24  ;;  %s672_s30 = scalar_lea.vmem %s792_s5, %s492_s24 }
  0x16 PF: > { %v294_v1 = vld [vmem:[%s790_s3 + $0x80] sm:$0xff]  ;;  %v295_v2 = vld [vmem:[%s790_s3 + $0x88] sm:$0xff]  ;;  %v296_v6 = vld [vmem:[%s790_s3 + $0x90] sm:$0xff]  ;;  %s275_s9 = sld [smem:[#allocation3]] }
  0x17   : > { %v278_v3 = vld [vmem:[%s790_s3] sm:$0xff]  ;;  %v533_v4 = vpack.c.bf16 %v295_v2, %v294_v1  ;;  %v279_v5 = vld [vmem:[%s790_s3 + $0x8] sm:$0xff]  ;;  %v297_v7 = vld [vmem:[%s790_s3 + $0x98] sm:$0xff] }
  0x18   : > { %v535_v8 = vpack.c.bf16 %v279_v5, %v278_v3  ;;  %v537_v9 = vpack.c.bf16 %v297_v7, %v296_v6  ;;  %v280_v10 = vld [vmem:[%s790_s3 + $0x10] sm:$0xff]  ;;  %v281_v11 = vld [vmem:[%s790_s3 + $0x18] sm:$0xff]  ;;  %v298_v12 = vld [vmem:[%s790_s3 + $0xa0] sm:$0xff] }
  0x19   : > { %534 = vmatprep.subr.bf16.mxu0 %v533_v4  ;;  %v299_v13 = vld [vmem:[%s790_s3 + $0xa8] sm:$0xff]  ;;  %v539_v14 = vpack.c.bf16 %v281_v11, %v280_v10  ;;  %v282_v16 = vld [vmem:[%s790_s3 + $0x20] sm:$0xff]  ;;  %v300_v18 = vld [vmem:[%s790_s3 + $0xb0] sm:$0xff] }
  0x1a   : > { %536 = vmatpush3.bf16.msra.mxu0 %v535_v8  ;;  %v541_v15 = vpack.c.bf16 %v299_v13, %v298_v12  ;;  %v283_v17 = vld [vmem:[%s790_s3 + $0x28] sm:$0xff]  ;;  %v301_v19 = vld [vmem:[%s790_s3 + $0xb8] sm:$0xff]  ;;  %v284_v22 = vld [vmem:[%s790_s3 + $0x30] sm:$0xff] }
  0x1b   : > { %538 = vmatprep.subr.bf16.mxu0 %v537_v9  ;;  %v543_v20 = vpack.c.bf16 %v283_v17, %v282_v16  ;;  %v545_v21 = vpack.c.bf16 %v301_v19, %v300_v18  ;;  %v285_v23 = vld [vmem:[%s790_s3 + $0x38] sm:$0xff]  ;;  %v302_v24 = vld [vmem:[%s790_s3 + $0xc0] sm:$0xff]  ;;  %v303_v25 = vld [vmem:[%s790_s3 + $0xc8] sm:$0xff] }
  0x1c   : > { %v276_v26 = vld [vmem:[#allocation2] sm:$0xff]  ;;  %v547_v27 = vpack.c.bf16 %v285_v23, %v284_v22  ;;  %v549_v28 = vpack.c.bf16 %v303_v25, %v302_v24  ;;  %v287_v30 = vld [vmem:[%s790_s3 + $0x48] sm:$0xff]  ;;  %v304_v31 = vld [vmem:[%s790_s3 + $0xd0] sm:$0xff]  ;;  %s389_s10 = ssub.f32 1.0, %s275_s9  ;;  %v387_v52 = vstv %s275_s9 }
  0x1d   : > { %381 = vmatprep.mubr.f32.mxu0 %v276_v26  ;;  %v286_v29 = vld [vmem:[%s790_s3 + $0x40] sm:$0xff]  ;;  %v305_v32 = vld [vmem:[%s790_s3 + $0xd8] sm:$0xff]  ;;  %v288_v35 = vld [vmem:[%s790_s3 + $0x50] sm:$0xff]  ;;  %v388_v57 = vmul.f32 %v387_v52, %v276_v26 }
  0x1e   : > { %540 = vmatpush3.bf16.msra.mxu0 %v539_v14  ;;  %v551_v33 = vpack.c.bf16 %v287_v30, %v286_v29  ;;  %v553_v34 = vpack.c.bf16 %v305_v32, %v304_v31  ;;  %v289_v36 = vld [vmem:[%s790_s3 + $0x58] sm:$0xff]  ;;  %v306_v37 = vld [vmem:[%s790_s3 + $0xe0] sm:$0xff]  ;;  %v307_v38 = vld [vmem:[%s790_s3 + $0xe8] sm:$0xff]  ;;  %v390_v56 = vstv %s389_s10 }
  0x1f   : > { %542 = vmatprep.subr.bf16.mxu0 %v541_v15  ;;  %v555_v39 = vpack.c.bf16 %v289_v36, %v288_v35  ;;  %v557_v40 = vpack.c.bf16 %v307_v38, %v306_v37  ;;  %v290_v41 = vld [vmem:[%s790_s3 + $0x60] sm:$0xff]  ;;  %v291_v42 = vld [vmem:[%s790_s3 + $0x68] sm:$0xff]  ;;  %v308_v43 = vld [vmem:[%s790_s3 + $0xf0] sm:$0xff] }
  0x20   : > { %v309_v44 = vld [vmem:[%s790_s3 + $0xf8] sm:$0xff]  ;;  %v559_v45 = vpack.c.bf16 %v291_v42, %v290_v41  ;;  %v292_v47 = vld [vmem:[%s790_s3 + $0x70] sm:$0xff]  ;;  %v277_v50 = vld [vmem:[%s667_s27] sm:$0xff] }
  0x21   : > { %v561_v46 = vpack.c.bf16 %v309_v44, %v308_v43  ;;  %v293_v48 = vld [vmem:[%s790_s3 + $0x78] sm:$0xff]  ;;  %v495_v53 = vld [vmem:[%s791_s4] ss:$0 sm:$0xff] }
  0x22   : > { %544 = vmatpush3.bf16.msra.mxu0 %v543_v20  ;;  %v563_v49 = vpack.c.bf16 %v293_v48, %v292_v47 }
  0x23   : > { %546 = vmatprep.subr.bf16.mxu0 %v545_v21 }
  0x26   : > { %548 = vmatpush3.bf16.msra.mxu0 %v547_v27 }
  0x27   : > { %550 = vmatprep.subr.bf16.mxu0 %v549_v28 }
  0x2a   : > { %552 = vmatpush3.bf16.msra.mxu0 %v551_v33 }
  0x2b   : > { %554 = vmatprep.subr.bf16.mxu0 %v553_v34 }
  0x2e   : > { %556 = vmatpush3.bf16.msra.mxu0 %v555_v39 }
  0x2f   : > { %558 = vmatprep.subr.bf16.mxu0 %v557_v40 }
  0x32   : > { %560 = vmatpush3.bf16.msra.mxu0 %v559_v45 }
  0x33   : > { %562 = vmatprep.subr.bf16.mxu0 %v561_v46 }
  0x36   : > { %564 = vmatpush3.bf16.msra.mxu0 %v563_v49 }
  0x39   : > { %382 = vmatmul.mubr.f32.vlgmr.msra.gmra.mrb[0].mxu0 %v277_v50 }
 0x10c   : > { %v530_v51 = vpop.f32.mrb[0].mxu0 }
 0x10d   : > { %v531_v54 = vpop.f32.mrb[1].mxu0 }
 0x10e   : > { %v532_v55 = vadd.f32 %v531_v54, %v530_v51 }
 0x110   : > { %v384_v58 = vadd.f32 %v532_v55, %v495_v53 }
 0x112   : > { %v391_v59 = vmul.f32 %v390_v56, %v384_v58 }
 0x114   : > { %v392_v60 = vadd.f32 %v391_v59, %v388_v57 }
 0x116   : > { %v393_v61 = vmax.f32 %v392_v60, 0.0 }
 0x118   : > { %394 = vst [vmem:[#allocation2] sm:$0xff] %v393_v61  ;;  %395 = vst [vmem:[%s672_s30] sm:$0xff] %v393_v61 }
 0x119 PF: > { %s16_s22 = sadd.s32 1, %s611_s22   ;;  %s793_s20 = smov %s607_s21 }
 0x11a   : > { %p13_p6 = scmp.ge.s32.totalorder %s16_s22, 18   ;;  %s794_s21 = smov %s796_s0 }
 0x11c   :  { %15 = sbr.rel (!%p13_p6) target bundleno = 2 (0x2), region = 77 }

</bundles_post_ra>
